<compile_context>
chip_gen: v7x
topology: tpu7x:2x2x1
jax: 0.10.0
libtpu: 0.0.40
codegen_flags: <defaults>
</compile_context>

<pallas_src>
import numpy as np
import jax
import jax.numpy as jnp
from jax.experimental import pallas as pl
from jax.experimental.pallas import tpu as pltpu


# ----------------------------------------------------------------------------- helpers / glue
def _round_up(x, m):
    return ((x + m - 1) // m) * m


def _legendre_eval(l, t):
    """P_l(t) via Bonnet recurrence (host-side, replaces scipy.special.legendre)."""
    t = np.asarray(t, dtype=np.float64)
    if l == 0:
        return np.ones_like(t)
    p_prev = np.ones_like(t)
    p = t.copy()
    for n in range(1, l):
        p_next = ((2 * n + 1) * t * p - n * p_prev) / (n + 1)
        p_prev, p = p, p_next
    return p


class FuncSpace:
    """Synthetic FuncSpace (external dependency of the torch module):
    real even spherical-harmonic basis up to degree 2 -> K = 6, degrees n."""

    def __init__(self):
        self.n = np.array([0, 2, 2, 2, 2, 2], dtype=np.int32)
        self.K = int(len(self.n))

    def harmonic_expansion(self, dirs):
        # dirs: (..., 3) unit vectors -> (..., K). Small elementwise polynomial (glue).
        x, y, z = dirs[..., 0], dirs[..., 1], dirs[..., 2]
        c00 = 0.5 / np.sqrt(np.pi)
        c2m = 0.5 * np.sqrt(15.0 / np.pi)
        c20 = 0.25 * np.sqrt(5.0 / np.pi)
        c22 = 0.25 * np.sqrt(15.0 / np.pi)
        return jnp.stack(
            [
                jnp.full_like(x, c00),
                c2m * x * y,
                c2m * y * z,
                c20 * (3.0 * z * z - 1.0),
                c2m * x * z,
                c22 * (x * x - y * y),
            ],
            axis=-1,
        ).astype(jnp.float32)


# --------------------------------------------------------------------------------- kernel
def _make_eig_kernel(nb, kp):
    """Eigen-values rho_k for one block of (sample*fiber) rows, ALL b-values and ALL K basis
    functions, written as a lane-dense (TM, nb*kp) slab."""

    def _eig_kernel(bvals_ref, da_ref, dpar_ref, dperp_ref, z_ref, t2_ref, legw_ref, out_ref):
        d_a = da_ref[...]           # (TM, 1)
        d_par = dpar_ref[...]       # (TM, 1)
        d_perp = dperp_ref[...]     # (TM, 1)
        z = z_ref[...]              # (TM, 1)
        one_m_z = 1.0 - z
        t2 = t2_ref[...]            # (1, Tp)   t^2 at quadrature nodes (zero-padded)
        legw = legw_ref[...]        # (Tp, kp)  trapezoid-weighted Legendre, per-basis columns

        # Per-row factors hoisted out of the b loop (VPU work on (TM,1) only).
        neg_da = -d_a                      # -D_a
        neg_dd = d_perp - d_par            # -(D_e_parallel - D_e_perp)
        neg_dperp = -d_perp                # -D_e_perp

        # nb is small and static -> unrolled loop; inputs reused from VMEM/vregs.
        for ib in range(nb):
            b = bvals_ref[ib]                            # scalar f32 from SMEM
            a1 = b * neg_da                              # (TM, 1)
            a2 = b * neg_dd                              # (TM, 1)
            c2 = one_m_z * jnp.exp(b * neg_dperp)        # (TM, 1) hoisted per-row factor
            # StandardModel(t) at every quadrature node: VPU + EUP exp
            f = z * jnp.exp(a1 * t2) + c2 * jnp.exp(a2 * t2)          # (TM, Tp)
            # trapezoid integral against every basis function == one MXU matmul,
            # stored as a full unmasked 128-lane slab.
            out_ref[:, ib * kp:(ib + 1) * kp] = jnp.dot(
                f, legw, preferred_element_type=jnp.float32)

    return _eig_kernel


# --------------------------------------------------------------------------------- wrapper
def simulator_sm_forward(directs, weights, shapes, func_space, bvals, num_t=1000):
    directs = jnp.asarray(directs, jnp.float32)
    weights = jnp.asarray(weights, jnp.float32)
    shapes = jnp.asarray(shapes, jnp.float32)

    N, F, _ = shapes.shape
    K = int(func_space.K)
    l_ks, l_idx = np.unique(np.asarray(func_space.n), return_inverse=True)
    nb = int(len(bvals))

    # ---- host-side quadrature setup (glue)
    t = np.linspace(0.0, 1.0, num_t)
    dx = 1.0 / num_t                                   # matches torch.trapz(..., dx=1/num_t)
    w_trap = np.full(num_t, dx)
    w_trap[0] *= 0.5
    w_trap[-1] *= 0.5
    leg_u = np.stack([_legendre_eval(int(l), t) for l in l_ks], axis=-1)   # (T, nL)
    leg_k = leg_u[:, l_idx]                                                # (T, K) per-basis

    Tp = _round_up(num_t, 128)       # lane-pad the quadrature axis
    Kp = _round_up(K, 128)           # lane width of each per-b output slab
    legw_p = np.zeros((Tp, Kp), np.float32)
    legw_p[:num_t, :K] = leg_k * w_trap[:, None]
    t2_p = np.zeros((1, Tp), np.float32)
    t2_p[0, :num_t] = t * t

    # ---- flatten (sample, fiber), even-split row tiling, pad rows
    M = N * F
    n_tiles = max(1, -(-M // 512))                 # ceil(M / 512)
    TM = _round_up(-(-M // n_tiles), 8)            # even rows per tile, sublane-aligned, <= 512
    Mp = n_tiles * TM
    sh_flat = shapes.reshape(M, 4)
    if Mp > M:
        sh_flat = jnp.concatenate([sh_flat, jnp.zeros((Mp - M, 4), jnp.float32)], axis=0)
    d_a = sh_flat[:, 0:1]
    d_par = sh_flat[:, 1:2]
    d_perp = sh_flat[:, 2:3]
    z = sh_flat[:, 3:4]
    bvals_arr = jnp.asarray(bvals, jnp.float32)

    eig_slab = pl.pallas_call(
        _make_eig_kernel(nb, Kp),
        out_shape=jax.ShapeDtypeStruct((Mp, nb * Kp), jnp.float32),
        grid_spec=pltpu.PrefetchScalarGridSpec(
            num_scalar_prefetch=0,
            grid=(n_tiles,),
            in_specs=[
                pl.BlockSpec(memory_space=pltpu.MemorySpace.SMEM),   # bvals (nb,)
                pl.BlockSpec((TM, 1), lambda im: (im, 0)),           # D_a
                pl.BlockSpec((TM, 1), lambda im: (im, 0)),           # D_e_parallel
                pl.BlockSpec((TM, 1), lambda im: (im, 0)),           # D_e_perp
                pl.BlockSpec((TM, 1), lambda im: (im, 0)),           # z_frac
                pl.BlockSpec((1, Tp), lambda im: (0, 0)),            # t^2 (resident, const index)
                pl.BlockSpec((Tp, Kp), lambda im: (0, 0)),           # Legendre * trapz weights
            ],
            out_specs=pl.BlockSpec((TM, nb * Kp), lambda im: (im, 0)),
        ),
        compiler_params=pltpu.CompilerParams(
            dimension_semantics=("parallel",),
            vmem_limit_bytes=48 * 1024 * 1024,   # headroom for (512, Tp) f32 intermediates; safe on v5e/v6e/v7x
        ),
    )(bvals_arr, d_a, d_par, d_perp, z, jnp.asarray(t2_p), jnp.asarray(legw_p))

    # (Mp, nb*Kp) -> (N, F, nb, K) -> eigen_values (N, nb, F, K)
    eig = eig_slab[:M].reshape(N, F, nb, Kp)[..., :K]
    eigen_values = jnp.transpose(eig, (0, 2, 1, 3))

    # ---- ODF: harmonic expansion (external FuncSpace, tiny -> wrapper glue)
    odf = func_space.harmonic_expansion(directs.reshape(N * F, 3)).reshape(N, F, K)

    # ---- fiber combine: a few hundred elements -> plain einsum (no second kernel)
    stensor = jnp.einsum("nf,nbfk,nfk->nbk", weights, eigen_values, odf)

    return {
        "Stensor": stensor,            # (N, nb, K)
        "ODFtensor": odf,              # (N, F, K)
        "eigen_values": eigen_values,  # (N, nb, F, K)
    }


# -------------------------------------------------------------------------- numpy reference
def _sh_expansion_np(dirs):
    x, y, z = dirs[:, 0], dirs[:, 1], dirs[:, 2]
    c00 = 0.5 / np.sqrt(np.pi)
    c2m = 0.5 * np.sqrt(15.0 / np.pi)
    c20 = 0.25 * np.sqrt(5.0 / np.pi)
    c22 = 0.25 * np.sqrt(15.0 / np.pi)
    return np.stack(
        [np.full_like(x, c00), c2m * x * y, c2m * y * z,
         c20 * (3 * z * z - 1), c2m * x * z, c22 * (x * x - y * y)], axis=-1)


def _reference_forward(directs, weights, shapes, n_degrees, bvals, num_t):
    N, F, _ = shapes.shape
    K = len(n_degrees)
    l_ks, l_idx = np.unique(n_degrees, return_inverse=True)
    nb = len(bvals)
    t = np.linspace(0.0, 1.0, num_t)
    dx = 1.0 / num_t
    eig = np.zeros((N, nb, F, K))
    odf = np.zeros((N, F, K))
    for nf in range(F):
        sh = shapes[:, nf, :]
        d_a, d_par, d_perp, z = sh[:, 0:1], sh[:, 1:2], sh[:, 2:3], sh[:, 3:4]
        for ixk, l in enumerate(l_ks):
            P = _legendre_eval(int(l), t)[None, :]
            for ib, b in enumerate(bvals):
                f = z * np.exp(-b * d_a * t[None] ** 2) + (1 - z) * np.exp(
                    -b * d_perp - b * (d_par - d_perp) * t[None] ** 2
                )
                y = f * P
                val = 0.5 * dx * (y[:, 1:] + y[:, :-1]).sum(axis=-1)  # torch.trapz(dx=1/num_t)
                eig[:, ib, nf, l_idx == ixk] = val[:, None]
        odf[:, nf, :] = _sh_expansion_np(directs[:, nf, :])
    s_byfib = weights[:, None, :, None] * eig * odf[:, None, :, :]
    return s_byfib.sum(axis=2), odf, eig


# ----------------------------------------------------------------------------------- main
if __name__ == "__main__":
    key = jax.random.PRNGKey(0)
    k1, k2, k3 = jax.random.split(key, 3)
    Nsamples, num_fibers, num_t = 8, 2, 256
    bvals = [1.0, 2.0, 3.0]
    fs = FuncSpace()

    d = jax.random.normal(k1, (Nsamples, num_fibers, 3), jnp.float32)
    directs = d / jnp.linalg.norm(d, axis=-1, keepdims=True)
    weights = jax.random.uniform(k2, (Nsamples, num_fibers), jnp.float32, 0.2, 1.0)
    weights = weights / jnp.sum(weights, axis=-1, keepdims=True)
    u = jax.random.uniform(k3, (Nsamples, num_fibers, 4), jnp.float32)
    shapes = jnp.stack(
        [
            0.5 + 2.5 * u[..., 0],    # D_a
            0.5 + 2.5 * u[..., 1],    # D_e_parallel
            0.05 + 0.95 * u[..., 2],  # D_e_perp
            u[..., 3],                # z_frac
        ],
        axis=-1,
    )

    out = simulator_sm_forward(directs, weights, shapes, fs, bvals, num_t=num_t)
    out = jax.tree_util.tree_map(jax.block_until_ready, out)

    ref_S, ref_odf, ref_eig = _reference_forward(
        np.asarray(directs, np.float64),
        np.asarray(weights, np.float64),
        np.asarray(shapes, np.float64),
        np.asarray(fs.n),
        bvals,
        num_t,
    )

    assert out["Stensor"].shape == (Nsamples, len(bvals), fs.K)
    assert out["ODFtensor"].shape == (Nsamples, num_fibers, fs.K)
    assert out["eigen_values"].shape == (Nsamples, len(bvals), num_fibers, fs.K)
    assert np.allclose(np.asarray(out["eigen_values"]), ref_eig, rtol=2e-3, atol=1e-5)
    assert np.allclose(np.asarray(out["ODFtensor"]), ref_odf, rtol=2e-3, atol=1e-5)
    assert np.allclose(np.asarray(out["Stensor"]), ref_S, rtol=2e-3, atol=1e-5)
    print("KERNEL_OK")
</pallas_src>

<mosaic_0001>
module attributes {stable_mosaic.version = 11 : i64} {
  func.func @_eig_kernel(%arg0: i32, %arg1: memref<3xf32, #tpu.memory_space<smem>>, %arg2: memref<16x1xf32, #tpu.memory_space<vmem>>, %arg3: memref<16x1xf32, #tpu.memory_space<vmem>>, %arg4: memref<16x1xf32, #tpu.memory_space<vmem>>, %arg5: memref<16x1xf32, #tpu.memory_space<vmem>>, %arg6: memref<1x256xf32, #tpu.memory_space<vmem>>, %arg7: memref<256x128xf32, #tpu.memory_space<vmem>>, %arg8: memref<16x384xf32, #tpu.memory_space<vmem>>) attributes {dimension_semantics = [#tpu.dimension_semantics<parallel>], iteration_bounds = array<i64: 1>, scalar_prefetch = 0 : i64, scratch_operands = 0 : i64, tpu.core_type = #tpu.core_type<tc>, window_params = [{transform_indices = @transform_0, window_bounds = array<i64: 3>}, {transform_indices = @transform_1, window_bounds = array<i64: 16, 1>}, {transform_indices = @transform_2, window_bounds = array<i64: 16, 1>}, {transform_indices = @transform_3, window_bounds = array<i64: 16, 1>}, {transform_indices = @transform_4, window_bounds = array<i64: 16, 1>}, {pipeline_mode = #tpu.pipeline_mode<synchronous>, transform_indices = @transform_5, window_bounds = array<i64: 1, 256>}, {pipeline_mode = #tpu.pipeline_mode<synchronous>, transform_indices = @transform_6, window_bounds = array<i64: 256, 128>}, {transform_indices = @transform_7, window_bounds = array<i64: 16, 384>}]} {
    %c0 = arith.constant 0 : index
    %c0_0 = arith.constant 0 : index
    %0 = vector.load %arg2[%c0, %c0_0] : memref<16x1xf32, #tpu.memory_space<vmem>>, vector<16x1xf32>
    %c0_1 = arith.constant 0 : index
    %c0_2 = arith.constant 0 : index
    %1 = vector.load %arg3[%c0_1, %c0_2] : memref<16x1xf32, #tpu.memory_space<vmem>>, vector<16x1xf32>
    %c0_3 = arith.constant 0 : index
    %c0_4 = arith.constant 0 : index
    %2 = vector.load %arg4[%c0_3, %c0_4] : memref<16x1xf32, #tpu.memory_space<vmem>>, vector<16x1xf32>
    %c0_5 = arith.constant 0 : index
    %c0_6 = arith.constant 0 : index
    %3 = vector.load %arg5[%c0_5, %c0_6] : memref<16x1xf32, #tpu.memory_space<vmem>>, vector<16x1xf32>
    %cst = arith.constant 1.000000e+00 : f32
    %4 = vector.broadcast %cst : f32 to vector<16x1xf32>
    %5 = arith.subf %4, %3 : vector<16x1xf32>
    %c0_7 = arith.constant 0 : index
    %c0_8 = arith.constant 0 : index
    %6 = vector.load %arg6[%c0_7, %c0_8] : memref<1x256xf32, #tpu.memory_space<vmem>>, vector<1x256xf32>
    %c0_9 = arith.constant 0 : index
    %c0_10 = arith.constant 0 : index
    %7 = vector.load %arg7[%c0_9, %c0_10] : memref<256x128xf32, #tpu.memory_space<vmem>>, vector<256x128xf32>
    %cst_11 = arith.constant 0.000000e+00 : f32
    %8 = vector.broadcast %cst_11 : f32 to vector<16x1xf32>
    %9 = arith.subf %8, %0 : vector<16x1xf32>
    %10 = arith.subf %2, %1 : vector<16x1xf32>
    %cst_12 = arith.constant 0.000000e+00 : f32
    %11 = vector.broadcast %cst_12 : f32 to vector<16x1xf32>
    %12 = arith.subf %11, %2 : vector<16x1xf32>
    %c0_13 = arith.constant 0 : index
    %13 = memref.load %arg1[%c0_13] : memref<3xf32, #tpu.memory_space<smem>>
    %14 = vector.broadcast %13 : f32 to vector<16x1xf32>
    %15 = arith.mulf %14, %9 : vector<16x1xf32>
    %16 = vector.broadcast %13 : f32 to vector<16x1xf32>
    %17 = arith.mulf %16, %10 : vector<16x1xf32>
    %18 = vector.broadcast %13 : f32 to vector<16x1xf32>
    %19 = arith.mulf %18, %12 : vector<16x1xf32>
    %20 = math.exp %19 : vector<16x1xf32>
    %21 = arith.mulf %5, %20 : vector<16x1xf32>
    %22 = vector.broadcast %15 : vector<16x1xf32> to vector<16x256xf32>
    %23 = vector.broadcast %6 : vector<1x256xf32> to vector<16x256xf32>
    %24 = arith.mulf %22, %23 : vector<16x256xf32>
    %25 = math.exp %24 : vector<16x256xf32>
    %26 = vector.broadcast %3 : vector<16x1xf32> to vector<16x256xf32>
    %27 = arith.mulf %26, %25 : vector<16x256xf32>
    %28 = vector.broadcast %17 : vector<16x1xf32> to vector<16x256xf32>
    %29 = vector.broadcast %6 : vector<1x256xf32> to vector<16x256xf32>
    %30 = arith.mulf %28, %29 : vector<16x256xf32>
    %31 = math.exp %30 : vector<16x256xf32>
    %32 = vector.broadcast %21 : vector<16x1xf32> to vector<16x256xf32>
    %33 = arith.mulf %32, %31 : vector<16x256xf32>
    %34 = arith.addf %27, %33 : vector<16x256xf32>
    %cst_14 = arith.constant dense<0.000000e+00> : vector<16x128xf32>
    %35 = tpu.matmul %34, %7, %cst_14 {dimension_numbers = #tpu.dot_dimension_numbers<[1], [0], [0], [1], [0, 0, 1, 1], [], []>} : vector<16x256xf32>, vector<256x128xf32>, vector<16x128xf32> -> vector<16x128xf32>
    %c0_15 = arith.constant 0 : index
    %c0_16 = arith.constant 0 : index
    %36 = vector.load %arg8[%c0_15, %c0_16] : memref<16x384xf32, #tpu.memory_space<vmem>>, vector<16x128xf32>
    tpu.vector_store %arg8[%c0_15, %c0_16], %35 {strides = array<i32>} : memref<16x384xf32, #tpu.memory_space<vmem>>, vector<16x128xf32>,
    %c1 = arith.constant 1 : index
    %37 = memref.load %arg1[%c1] : memref<3xf32, #tpu.memory_space<smem>>
    %38 = vector.broadcast %37 : f32 to vector<16x1xf32>
    %39 = arith.mulf %38, %9 : vector<16x1xf32>
    %40 = vector.broadcast %37 : f32 to vector<16x1xf32>
    %41 = arith.mulf %40, %10 : vector<16x1xf32>
    %42 = vector.broadcast %37 : f32 to vector<16x1xf32>
    %43 = arith.mulf %42, %12 : vector<16x1xf32>
    %44 = math.exp %43 : vector<16x1xf32>
    %45 = arith.mulf %5, %44 : vector<16x1xf32>
    %46 = vector.broadcast %39 : vector<16x1xf32> to vector<16x256xf32>
    %47 = vector.broadcast %6 : vector<1x256xf32> to vector<16x256xf32>
    %48 = arith.mulf %46, %47 : vector<16x256xf32>
    %49 = math.exp %48 : vector<16x256xf32>
    %50 = vector.broadcast %3 : vector<16x1xf32> to vector<16x256xf32>
    %51 = arith.mulf %50, %49 : vector<16x256xf32>
    %52 = vector.broadcast %41 : vector<16x1xf32> to vector<16x256xf32>
    %53 = vector.broadcast %6 : vector<1x256xf32> to vector<16x256xf32>
    %54 = arith.mulf %52, %53 : vector<16x256xf32>
    %55 = math.exp %54 : vector<16x256xf32>
    %56 = vector.broadcast %45 : vector<16x1xf32> to vector<16x256xf32>
    %57 = arith.mulf %56, %55 : vector<16x256xf32>
    %58 = arith.addf %51, %57 : vector<16x256xf32>
    %cst_17 = arith.constant dense<0.000000e+00> : vector<16x128xf32>
    %59 = tpu.matmul %58, %7, %cst_17 {dimension_numbers = #tpu.dot_dimension_numbers<[1], [0], [0], [1], [0, 0, 1, 1], [], []>} : vector<16x256xf32>, vector<256x128xf32>, vector<16x128xf32> -> vector<16x128xf32>
    %c0_18 = arith.constant 0 : index
    %c128 = arith.constant 128 : index
    %60 = vector.load %arg8[%c0_18, %c128] : memref<16x384xf32, #tpu.memory_space<vmem>>, vector<16x128xf32>
    tpu.vector_store %arg8[%c0_18, %c128], %59 {strides = array<i32>} : memref<16x384xf32, #tpu.memory_space<vmem>>, vector<16x128xf32>,
    %c2 = arith.constant 2 : index
    %61 = memref.load %arg1[%c2] : memref<3xf32, #tpu.memory_space<smem>>
    %62 = vector.broadcast %61 : f32 to vector<16x1xf32>
    %63 = arith.mulf %62, %9 : vector<16x1xf32>
    %64 = vector.broadcast %61 : f32 to vector<16x1xf32>
    %65 = arith.mulf %64, %10 : vector<16x1xf32>
    %66 = vector.broadcast %61 : f32 to vector<16x1xf32>
    %67 = arith.mulf %66, %12 : vector<16x1xf32>
    %68 = math.exp %67 : vector<16x1xf32>
    %69 = arith.mulf %5, %68 : vector<16x1xf32>
    %70 = vector.broadcast %63 : vector<16x1xf32> to vector<16x256xf32>
    %71 = vector.broadcast %6 : vector<1x256xf32> to vector<16x256xf32>
    %72 = arith.mulf %70, %71 : vector<16x256xf32>
    %73 = math.exp %72 : vector<16x256xf32>
    %74 = vector.broadcast %3 : vector<16x1xf32> to vector<16x256xf32>
    %75 = arith.mulf %74, %73 : vector<16x256xf32>
    %76 = vector.broadcast %65 : vector<16x1xf32> to vector<16x256xf32>
    %77 = vector.broadcast %6 : vector<1x256xf32> to vector<16x256xf32>
    %78 = arith.mulf %76, %77 : vector<16x256xf32>
    %79 = math.exp %78 : vector<16x256xf32>
    %80 = vector.broadcast %69 : vector<16x1xf32> to vector<16x256xf32>
    %81 = arith.mulf %80, %79 : vector<16x256xf32>
    %82 = arith.addf %75, %81 : vector<16x256xf32>
    %cst_19 = arith.constant dense<0.000000e+00> : vector<16x128xf32>
    %83 = tpu.matmul %82, %7, %cst_19 {dimension_numbers = #tpu.dot_dimension_numbers<[1], [0], [0], [1], [0, 0, 1, 1], [], []>} : vector<16x256xf32>, vector<256x128xf32>, vector<16x128xf32> -> vector<16x128xf32>
    %c0_20 = arith.constant 0 : index
    %c256 = arith.constant 256 : index
    %84 = vector.load %arg8[%c0_20, %c256] : memref<16x384xf32, #tpu.memory_space<vmem>>, vector<16x128xf32>
    tpu.vector_store %arg8[%c0_20, %c256], %83 {strides = array<i32>} : memref<16x384xf32, #tpu.memory_space<vmem>>, vector<16x128xf32>,
    return
  }
  func.func @transform_0(%arg0: i32) -> i32 {
    %c0_i32 = arith.constant 0 : i32
    %c0_i32_0 = arith.constant 0 : i32
    return %c0_i32 : i32
  }
  func.func @transform_1(%arg0: i32) -> (i32, i32) {
    %c0_i32 = arith.constant 0 : i32
    %c0_i32_0 = arith.constant 0 : i32
    return %arg0, %c0_i32 : i32, i32
  }
  func.func @transform_2(%arg0: i32) -> (i32, i32) {
    %c0_i32 = arith.constant 0 : i32
    %c0_i32_0 = arith.constant 0 : i32
    return %arg0, %c0_i32 : i32, i32
  }
  func.func @transform_3(%arg0: i32) -> (i32, i32) {
    %c0_i32 = arith.constant 0 : i32
    %c0_i32_0 = arith.constant 0 : i32
    return %arg0, %c0_i32 : i32, i32
  }
  func.func @transform_4(%arg0: i32) -> (i32, i32) {
    %c0_i32 = arith.constant 0 : i32
    %c0_i32_0 = arith.constant 0 : i32
    return %arg0, %c0_i32 : i32, i32
  }
  func.func @transform_5(%arg0: i32) -> (i32, i32) {
    %c0_i32 = arith.constant 0 : i32
    %c0_i32_0 = arith.constant 0 : i32
    %c0_i32_1 = arith.constant 0 : i32
    return %c0_i32, %c0_i32_0 : i32, i32
  }
  func.func @transform_6(%arg0: i32) -> (i32, i32) {
    %c0_i32 = arith.constant 0 : i32
    %c0_i32_0 = arith.constant 0 : i32
    %c0_i32_1 = arith.constant 0 : i32
    return %c0_i32, %c0_i32_0 : i32, i32
  }
  func.func @transform_7(%arg0: i32) -> (i32, i32) {
    %c0_i32 = arith.constant 0 : i32
    %c0_i32_0 = arith.constant 0 : i32
    return %arg0, %c0_i32 : i32, i32
  }
}

</mosaic_0001>

<bundles_post_ra>
// kernel: tpu_custom_call.1
= control target key start
LH: loop header
LB: loop body
LE: loop exit
PB: predicated region body
PF: predicated region fallthrough
CT: control target
= control target key end

     0   :  { %12 = vsyncpa [#allocation5], 0  ;;  %s1259_s0 = inlined_call_operand.vmem [shape: f32[3], index: 0, kind: input, shape index: {}]   ;;  %s1260_s1 = inlined_call_operand.vmem [shape: f32[16,1], index: 1, kind: input, shape index: {}]   ;;  %s1261_s2 = inlined_call_operand.vmem [shape: f32[16,1], index: 2, kind: input, shape index: {}]   ;;  %s1262_s3 = inlined_call_operand.vmem [shape: f32[16,1], index: 3, kind: input, shape index: {}]   ;;  %s1263_s4 = inlined_call_operand.vmem [shape: f32[16,1], index: 4, kind: input, shape index: {}]   ;;  %s1264_s5 = inlined_call_operand.vmem [shape: f32[1,256], index: 5, kind: input, shape index: {}]   ;;  %s1265_s6 = inlined_call_operand.hbm [shape: f32[256,128], index: 6, kind: input, shape index: {}]   ;;  %s1266_s7 = inlined_call_operand.hbm [shape: f32[16,384], index: 7, kind: output, shape index: {}]  }
   0x1   :  { %13 = vsyncpa [#allocation3], 0 }
   0x2   :  { %14 = vsyncpa [#allocation4], 0  ;;  %s21_s26 = sshll.u32 %s1259_s0, 4  ;;  %s22_s26 = int_to_ptr.vmem [resolvable:$true] %s21_s26 }
   0x3   :  { %s911_s27 = scalar_lea.vmem %s22_s26, 16  ;;  %p916_p1 = scmp.lt.s32.totalorder %s22_s26, %s22_s26 }
   0x4   :  { %p912_p0 = scmp.ne.s32.totalorder %s22_s26, %s911_s27  ;;  %p917_p2 = scmp.lt.s32.totalorder %s911_s27, %s911_s27 }
   0x6   :  { %p918_p3 = por %p917_p2, %p916_p1 }
   0x8   :  { %p919_p4 = pnand %p918_p3, %p912_p0 }
   0xa   :  { %922 = shalt.err (!%p919_p4)
}
   0xb   :  { %s973_s28 = smov [#allocation2]   ;;  %s974_s29 = smov [#allocation6]  }
   0xc   :  { %24 = dma.vmem_to_smem %s22_s26, 16, %s973_s28, [#allocation5]  }
   0xd   :  { %s40_s30 = sshll.u32 %s974_s29, 4  ;;  %s923_s10 = scalar_lea.hbm %s1265_s6, 4096  ;;  %s41_s30 = int_to_ptr.vmem [resolvable:$true] %s40_s30 }
   0xe   :  { %p924_p5 = scmp.ne.s32.totalorder %s1265_s6, %s923_s10  ;;  %p927_p6 = scmp.lt.u32.totalorder %s923_s10, %s1265_s6 }
  0x10   :  { %p929_p7 = pnand %p927_p6, %p924_p5 }
  0x12   :  { %932 = shalt.err (!%p929_p7)
}
  0x13   :  { %s933_s14 = scalar_lea.vmem %s41_s30, 4096  ;;  %p938_p9 = scmp.lt.s32.totalorder %s41_s30, %s41_s30 }
  0x14   :  { %p934_p8 = scmp.ne.s32.totalorder %s41_s30, %s933_s14  ;;  %p939_p10 = scmp.lt.s32.totalorder %s933_s14, %s933_s14 }
  0x16   :  { %p940_p11 = por %p939_p10, %p938_p9 }
  0x18   :  { %p941_p12 = pnand %p940_p11, %p934_p8 }
  0x1a   :  { %944 = shalt.err (!%p941_p12)
}
  0x1b   :  { %s975_s15 = smov 128   ;;  %s976_s16 = smov 8  }
  0x1c   :  { %46 = dma.hbm_to_vmem [thread:$0]  %s1265_s6, 4096, %s41_s30, [#allocation3], %s975_s15, %s975_s15, %s976_s16  }
  0x1d   :  { %967 = dma.done.wait [#allocation5], 16  }
  0x1e   :  { %968 = vsyncadd [#allocation5], 4294967280 }
  0x1f   :  { %969 = dma.done.wait [#allocation3], 4096  }
  0x20   :  { %970 = vsyncadd [#allocation3], 4294963200 }
  0x21   :  { %53 = sfence }
  0x22   :  { %v54_v0 = vld [vmem:[%s1260_s1] sm:$0xff]  ;;  %s613_s21 = sld [smem:[#allocation2 + $0x1]]  ;;  %s103_s22 = sld [smem:[#allocation2]]  ;;  %v977_v1 = vmov 0   ;;  %v82_v7 = vld [vmem:[#allocation6 + $0x88] sm:$0xff]  ;;  %v83_v11 = vld [vmem:[#allocation6 + $0x90] sm:$0xff] }
  0x23   :  { %850 = vset.pattern.permute.xlu1 %v977_v1  ;;  %849 = vset.pattern.permute.xlu0 %v977_v1  ;;  %v58_v2 = vld [vmem:[%s1262_s3] sm:$0xff]  ;;  %v1045_v4 = vsub.f32 0.0, %v54_v0  ;;  %v66_v10 = vld [vmem:[#allocation6 + $0x8] sm:$0xff]  ;;  %v84_v14 = vld [vmem:[#allocation6 + $0x98] sm:$0xff]  ;;  %s1089_s28 = sld [smem:[#allocation2 + $0x2]] }
  0x24   :  { %v56_v3 = vld [vmem:[%s1261_s2] sm:$0xff]  ;;  %v1047_v5 = vsub.f32 0.0, %v58_v2  ;;  %v67_v15 = vld [vmem:[#allocation6 + $0x10] sm:$0xff]  ;;  %v68_v16 = vld [vmem:[#allocation6 + $0x18] sm:$0xff]  ;;  %v1061_v19 = vpack.c.bf16 %v84_v14, %v83_v11 }
  0x25   :  { %v81_v6 = vld [vmem:[#allocation6 + $0x80] sm:$0xff]  ;;  %v1051_v12 = vsub.f32 %v58_v2, %v56_v3  ;;  %v1070_v23 = vpack.c.bf16 %v68_v16, %v67_v15  ;;  %v86_v25 = vld [vmem:[#allocation6 + $0xa8] sm:$0xff]  ;;  %v87_v34 = vld [vmem:[#allocation6 + $0xb0] sm:$0xff] }
  0x26   :  { %v1049_v8 = vpack.c.bf16 %v82_v7, %v81_v6  ;;  %v65_v9 = vld [vmem:[#allocation6] sm:$0xff]  ;;  %v70_v33 = vld [vmem:[#allocation6 + $0x28] sm:$0xff]  ;;  %v88_v35 = vld [vmem:[#allocation6 + $0xb8] sm:$0xff] }
  0x27   :  { %v1053_v13 = vpack.c.bf16 %v66_v10, %v65_v9  ;;  %v85_v24 = vld [vmem:[#allocation6 + $0xa0] sm:$0xff]  ;;  %v59_v36 = vld [vmem:[%s1262_s3 + $0x8] sm:$0xff]  ;;  %v71_v37 = vld [vmem:[#allocation6 + $0x30] sm:$0xff]  ;;  %v1097_v41 = vpack.c.bf16 %v88_v35, %v87_v34 }
  0x28   :  { %v1055_v17 = vstv %s613_s21  ;;  %v1057_v18 = vstv %s103_s22  ;;  %730 = vmatprep.subr.bf16.mxu0 %v1049_v8  ;;  %762 = vmatprep.subr.bf16.mxu1 %v1049_v8  ;;  %v1081_v31 = vpack.c.bf16 %v86_v25, %v85_v24  ;;  %v69_v32 = vld [vmem:[#allocation6 + $0x20] sm:$0xff]  ;;  %v72_v38 = vld [vmem:[#allocation6 + $0x38] sm:$0xff]  ;;  %v102_v42 = vsub.f32 0.0, %v59_v36  ;;  %v90_v45 = vld [vmem:[#allocation6 + $0xc8] sm:$0xff] }
  0x29   :  { %v283_v20 = vmul.f32 %v1055_v17, %v1045_v4  ;;  %v105_v21 = vmul.f32 %v1057_v18, %v1045_v4  ;;  %v109_v22 = vmul.f32 %v1057_v18, %v1047_v5  ;;  %732 = vmatpush3.bf16.msra.mxu0 %v1053_v13  ;;  %v287_v26 = vmul.f32 %v1055_v17, %v1047_v5  ;;  %v60_v39 = vld [vmem:[%s1263_s4] sm:$0xff]  ;;  %v55_v46 = vld [vmem:[%s1260_s1 + $0x8] sm:$0xff]  ;;  %v91_v55 = vld [vmem:[#allocation6 + $0xd0] sm:$0xff] }
  0x2a   :  { %764 = vmatpush3.bf16.msra.mxu1 %v1053_v13  ;;  %v285_v27 = vmul.f32 %v1055_v17, %v1051_v12  ;;  %v107_v28 = vmul.f32 %v1057_v18, %v1051_v12  ;;  %734 = vmatprep.subr.bf16.mxu0 %v1061_v19  ;;  %v1095_v40 = vpack.c.bf16 %v70_v33, %v69_v32  ;;  %v89_v44 = vld [vmem:[#allocation6 + $0xc0] sm:$0xff]  ;;  %v74_v49 = vld [vmem:[#allocation6 + $0x48] sm:$0xff]  ;;  %v1109_v50 = vsub.f32 1.0, %v60_v39  ;;  %v92_v56 = vld [vmem:[#allocation6 + $0xd8] sm:$0xff] }
  0x2b   :  { %297 = vperm.xlu1 %850, %v283_v20   ;;  %119 = vperm.xlu0 %849, %v105_v21   ;;  %v111_v29 = vmul.f32 1.442695, %v109_v22  ;;  %v289_v30 = vmul.f32 1.442695, %v287_v26  ;;  %v1101_v43 = vpack.c.bf16 %v72_v38, %v71_v37  ;;  %v1107_v47 = vpack.c.bf16 %v90_v45, %v89_v44  ;;  %v73_v48 = vld [vmem:[#allocation6 + $0x40] sm:$0xff]  ;;  %v57_v51 = vld [vmem:[%s1261_s2 + $0x8] sm:$0xff] }
  0x2c   :  { %766 = vmatprep.subr.bf16.mxu1 %v1061_v19  ;;  %v98_v52 = vsub.f32 0.0, %v55_v46  ;;  %v110_v53 = vmul.f32 %v1057_v18, %v102_v42  ;;  %v1118_v54 = vpack.c.bf16 %v74_v49, %v73_v48  ;;  %v1120_v58 = vsub.f32 %v59_v36, %v57_v51  ;;  %v75_v60 = vld [vmem:[#allocation6 + $0x50] sm:$0xff]  ;;  %v76_v61 = vld [vmem:[#allocation6 + $0x58] sm:$0xff]  ;;  %v93_v10 = vld [vmem:[#allocation6 + $0xe0] sm:$0xff] }
  0x2d   :  { %851 = vpow2.f32 %v111_v29  ;;  %736 = vmatpush3.bf16.msra.mxu0 %v1070_v23  ;;  %v439_v59 = vstv %s1089_s28  ;;  %v1126_v0 = vpack.c.bf16 %v92_v56, %v91_v55  ;;  %v288_v2 = vmul.f32 %v1055_v17, %v102_v42  ;;  %v94_v11 = vld [vmem:[#allocation6 + $0xe8] sm:$0xff]  ;;  %v77_v15 = vld [vmem:[#allocation6 + $0x60] sm:$0xff]  ;;  %v95_v25 = vld [vmem:[#allocation6 + $0xf0] sm:$0xff] }
  0x2e   :  { %853 = vpow2.f32 %v289_v30  ;;  %768 = vmatpush3.bf16.msra.mxu1 %v1070_v23  ;;  %738 = vmatprep.subr.bf16.mxu0 %v1081_v31  ;;  %v106_v3 = vmul.f32 %v1057_v18, %v98_v52  ;;  %v113_v6 = vmul.f32 1.442695, %v110_v53  ;;  %v444_v7 = vmul.f32 %v439_v59, %v1047_v5  ;;  %v78_v16 = vld [vmem:[#allocation6 + $0x68] sm:$0xff]  ;;  %v96_v26 = vld [vmem:[#allocation6 + $0xf8] sm:$0xff] }
  0x2f   :  { %323 = vperm.xlu1 %850, %v285_v27   ;;  %166 = vperm.xlu0 %849, %v107_v28   ;;  %v1133_v9 = vpack.c.bf16 %v76_v61, %v75_v60  ;;  %v108_v14 = vmul.f32 %v1057_v18, %v1120_v58  ;;  %v1140_v20 = vpack.c.bf16 %v94_v11, %v93_v10  ;;  %v291_v5 = vmul.f32 1.442695, %v288_v2  ;;  %v79_v28 = vld [vmem:[#allocation6 + $0x70] sm:$0xff]  ;;  %v80_v29 = vld [vmem:[#allocation6 + $0x78] sm:$0xff]  ;;  %v61_v35 = vld [vmem:[%s1263_s4 + $0x8] sm:$0xff] }
  0x30   :  { %770 = vmatprep.subr.bf16.mxu1 %v1081_v31  ;;  %v445_v21 = vmul.f32 %v439_v59, %v102_v42  ;;  %v284_v22 = vmul.f32 %v1055_v17, %v98_v52  ;;  %855 = vpow2.f32 %v113_v6  ;;  %v446_v24 = vmul.f32 1.442695, %v444_v7 }
  0x31   :  { %740 = vmatpush3.bf16.msra.mxu0 %v1095_v40  ;;  %v1144_v18 = vpack.c.bf16 %v78_v16, %v77_v15  ;;  %v286_v27 = vmul.f32 %v1055_v17, %v1120_v58  ;;  %v1151_v30 = vpack.c.bf16 %v96_v26, %v95_v25  ;;  %857 = vpow2.f32 %v291_v5 }
  0x32   :  { %772 = vmatpush3.bf16.msra.mxu1 %v1095_v40  ;;  %742 = vmatprep.subr.bf16.mxu0 %v1097_v41  ;;  %v448_v32 = vmul.f32 1.442695, %v445_v21  ;;  %v440_v33 = vmul.f32 %v439_v59, %v1045_v4  ;;  %859 = vpow2.f32 %v446_v24  ;;  %v1155_v34 = vpack.c.bf16 %v80_v29, %v79_v28 }
  0x33   :  { %152 = vperm.xlu0 %849, %v60_v39   ;;  %774 = vmatprep.subr.bf16.mxu1 %v1097_v41  ;;  %v441_v17 = vmul.f32 %v439_v59, %v98_v52  ;;  %v442_v4 = vmul.f32 %v439_v59, %v1051_v12  ;;  %v443_v36 = vmul.f32 %v439_v59, %v1120_v58  ;;  %v63_v37 = vsub.f32 1.0, %v61_v35 }
  0x34   :  { %861 = vpow2.f32 %v448_v32  ;;  %v128_v49 = vlaneseq }
  0x35   :  { %744 = vmatpush3.bf16.msra.mxu0 %v1101_v43 }
  0x36   :  { %776 = vmatpush3.bf16.msra.mxu1 %v1101_v43  ;;  %746 = vmatprep.subr.bf16.mxu0 %v1107_v47  ;;  %v129_v51 = vshrl.u32 %v128_v49, 7 }
  0x37   :  { %v852_v57 = vpop.eup %851  ;;  %778 = vmatprep.subr.bf16.mxu1 %v1107_v47 }
  0x38   :  { %v854_v62 = vpop.eup %853  ;;  %v115_v63 = vmul.f32 %v852_v57, %v1109_v50  ;;  %v130_v52 = vsub.s32 0, %v129_v51  ;;  %v134_v53 = vsub.s32 1, %v129_v51 }
  0x39   :  { %v293_v1 = vmul.f32 %v854_v62, %v1109_v50  ;;  %748 = vmatpush3.bf16.msra.mxu0 %v1118_v54 }
  0x3a   :  { %188 = vperm.xlu1 %850, %v115_v63   ;;  %780 = vmatpush3.bf16.msra.mxu1 %v1118_v54  ;;  %v856_v38 = vpop.eup %855 }
  0x3b   :  { %345 = vperm.xlu0 %849, %v293_v1   ;;  %750 = vmatprep.subr.bf16.mxu0 %v1126_v0  ;;  %v858_v39 = vpop.eup %857  ;;  %v116_v42 = vmul.f32 %v856_v38, %v63_v37 }
  0x3c   :  { %782 = vmatprep.subr.bf16.mxu1 %v1126_v0  ;;  %v860_v44 = vpop.eup %859  ;;  %v294_v12 = vmul.f32 %v858_v39, %v63_v37 }
  0x3d   :  { %752 = vmatpush3.bf16.msra.mxu0 %v1133_v9  ;;  %v450_v46 = vmul.f32 %v860_v44, %v1109_v50 }
  0x3e   :  { %124 = vperm.xlu1 %850, %v106_v3   ;;  %784 = vmatpush3.bf16.msra.mxu1 %v1133_v9  ;;  %v862_v45 = vpop.eup %861 }
  0x3f   :  { %171 = vperm.xlu0 %849, %v108_v14   ;;  %754 = vmatprep.subr.bf16.mxu0 %v1140_v20  ;;  %v451_v48 = vmul.f32 %v862_v45, %v63_v37 }
  0x40   :  { %786 = vmatprep.subr.bf16.mxu1 %v1140_v20 }
  0x41   :  { %756 = vmatpush3.bf16.msra.mxu0 %v1144_v18 }
  0x42   :  { %302 = vperm.xlu1 %850, %v284_v22   ;;  %788 = vmatpush3.bf16.msra.mxu1 %v1144_v18 }
  0x43   :  { %328 = vperm.xlu0 %849, %v286_v27   ;;  %758 = vmatprep.subr.bf16.mxu0 %v1151_v30 }
  0x44   :  { %790 = vmatprep.subr.bf16.mxu1 %v1151_v30 }
  0x45   :  { %760 = vmatpush3.bf16.msra.mxu0 %v1155_v34 }
  0x46   :  { %454 = vperm.xlu1 %850, %v440_v33   ;;  %792 = vmatpush3.bf16.msra.mxu1 %v1155_v34 }
  0x47   :  { %459 = vperm.xlu0 %849, %v441_v17   ;;  %794 = vmatprep.subr.bf16.mxu0 %v1049_v8 }
  0x48   :  { %825 = vmatprep.subr.bf16.mxu1 %v1049_v8  ;;  %v64_v8 = vld [vmem:[%s1264_s5] sm:$0x3]  ;;  %s978_s5 = smov [#allocation7]  }
  0x49   :  { %v1173_v55 = vrot.slane %v64_v8, %v130_v52  ;;  %v1175_v56 = vrot.slane %v64_v8, %v134_v53  ;;  %s600_s12 = sshll.u32 %s978_s5, 4  ;;  %s601_s12 = int_to_ptr.vmem [resolvable:$true] %s600_s12 }
  0x4a   :  { %480 = vperm.xlu1 %850, %v442_v4   ;;  %s945_s0 = scalar_lea.vmem %s601_s12, 768  ;;  %p950_p0 = scmp.lt.s32.totalorder %s601_s12, %s601_s12 }
  0x4b   :  { %485 = vperm.xlu0 %849, %v443_v36   ;;  %p946_p13 = scmp.ne.s32.totalorder %s601_s12, %s945_s0  ;;  %p951_p1 = scmp.lt.s32.totalorder %s945_s0, %s945_s0 }
  0x4d   :  { %p952_p2 = por %p951_p1, %p950_p0 }
  0x4e   :  { %157 = vperm.xlu1 %850, %v61_v35  }
  0x4f   :  { %193 = vperm.xlu0 %849, %v116_v42   ;;  %p953_p3 = pnand %p952_p2, %p946_p13 }
  0x52   :  { %350 = vperm.xlu1 %850, %v294_v12  }
  0x53   :  { %502 = vperm.xlu0 %849, %v450_v46  }
  0x56   :  { %507 = vperm.xlu1 %850, %v451_v48  }
  0xaa   :  { %v298_v57 = vpop.permute.xlu1 %297  ;;  %v120_v58 = vpop.permute.xlu0 %119 }
  0xab   :  { %v305_v50 = vmul.f32 %v298_v57, %v1173_v55  ;;  %v306_v59 = vmul.f32 %v298_v57, %v1175_v56  ;;  %v138_v60 = vmul.f32 %v1173_v55, %v120_v58  ;;  %v139_v61 = vmul.f32 %v1175_v56, %v120_v58 }
  0xad   :  { %v309_v62 = vmul.f32 1.442695, %v305_v50  ;;  %v311_v63 = vmul.f32 1.442695, %v306_v59  ;;  %v142_v1 = vmul.f32 1.442695, %v138_v60 }
  0xae   :  { %v144_v2 = vmul.f32 1.442695, %v139_v61  ;;  %v324_v3 = vpop.permute.xlu1 %323  ;;  %v167_v6 = vpop.permute.xlu0 %166 }
  0xaf   :  { %863 = vpow2.f32 %v309_v62  ;;  %v331_v7 = vmul.f32 %v324_v3, %v1173_v55  ;;  %v332_v10 = vmul.f32 %v324_v3, %v1175_v56  ;;  %v174_v11 = vmul.f32 %v167_v6, %v1173_v55 }
  0xb0   :  { %865 = vpow2.f32 %v311_v63  ;;  %v175_v14 = vmul.f32 %v167_v6, %v1175_v56 }
  0xb1   :  { %867 = vpow2.f32 %v142_v1  ;;  %v335_v15 = vmul.f32 1.442695, %v331_v7  ;;  %v337_v16 = vmul.f32 1.442695, %v332_v10  ;;  %v178_v5 = vmul.f32 1.442695, %v174_v11 }
  0xb2   :  { %869 = vpow2.f32 %v144_v2  ;;  %v180_v21 = vmul.f32 1.442695, %v175_v14  ;;  %v1185_v22 = vpop.permute.xlu0 %152 }
  0xb3   :  { %871 = vpow2.f32 %v335_v15 }
  0xb4   :  { %873 = vpow2.f32 %v337_v16 }
  0xb5   :  { %875 = vpow2.f32 %v178_v5 }
  0xb6   :  { %877 = vpow2.f32 %v180_v21 }
  0xb9   :  { %v864_v24 = vpop.eup %863  ;;  %v189_v25 = vpop.permute.xlu1 %188 }
  0xba   :  { %v866_v26 = vpop.eup %865  ;;  %v346_v27 = vpop.permute.xlu0 %345  ;;  %v317_v33 = vmul.f32 %v864_v24, %v1185_v22 }
  0xbb   :  { %v868_v28 = vpop.eup %867  ;;  %v318_v35 = vmul.f32 %v866_v26, %v1185_v22 }
  0xbc   :  { %v870_v29 = vpop.eup %869  ;;  %v160_v36 = vmul.f32 %v868_v28, %v1185_v22 }
  0xbd   :  { %v872_v32 = vpop.eup %871  ;;  %v125_v17 = vpop.permute.xlu1 %124  ;;  %v161_v48 = vmul.f32 %v870_v29, %v1185_v22 }
  0xbe   :  { %v874_v4 = vpop.eup %873  ;;  %v353_v37 = vmul.f32 %v872_v32, %v346_v27  ;;  %v140_v38 = vmul.f32 %v1173_v55, %v125_v17  ;;  %v141_v39 = vmul.f32 %v1175_v56, %v125_v17  ;;  %v172_v42 = vpop.permute.xlu0 %171 }
  0xbf   :  { %v876_v44 = vpop.eup %875  ;;  %v354_v12 = vmul.f32 %v874_v4, %v346_v27  ;;  %v176_v45 = vmul.f32 %v172_v42, %v1173_v55  ;;  %v177_v46 = vmul.f32 %v172_v42, %v1175_v56 }
  0xc0   :  { %v878_v49 = vpop.eup %877  ;;  %v196_v51 = vmul.f32 %v876_v44, %v189_v25  ;;  %v357_v52 = vadd.f32 %v353_v37, %v317_v33  ;;  %v146_v53 = vmul.f32 1.442695, %v140_v38  ;;  %v148_v8 = vmul.f32 1.442695, %v141_v39 }
  0xc1   :  { %v197_v57 = vmul.f32 %v878_v49, %v189_v25  ;;  %v182_v58 = vmul.f32 1.442695, %v176_v45  ;;  %v184_v50 = vmul.f32 1.442695, %v177_v46  ;;  %v303_v59 = vpop.permute.xlu1 %302  ;;  %v358_v60 = vadd.f32 %v354_v12, %v318_v35 }
  0xc2   :  { %v200_v61 = vadd.f32 %v196_v51, %v160_v36  ;;  %879 = vpow2.f32 %v146_v53  ;;  %v307_v62 = vmul.f32 %v303_v59, %v1173_v55  ;;  %v308_v63 = vmul.f32 %v303_v59, %v1175_v56  ;;  %v329_v1 = vpop.permute.xlu0 %328 }
  0xc3   :  { %881 = vpow2.f32 %v148_v8  ;;  %v333_v2 = vmul.f32 %v329_v1, %v1173_v55  ;;  %v334_v3 = vmul.f32 %v329_v1, %v1175_v56  ;;  %v201_v6 = vadd.f32 %v197_v57, %v161_v48  ;;  %425 = vmatprep.mubr.f32.mxu1 %v358_v60 }
  0xc4   :  { %883 = vpow2.f32 %v182_v58  ;;  %v313_v7 = vmul.f32 1.442695, %v307_v62  ;;  %v315_v10 = vmul.f32 1.442695, %v308_v63  ;;  %426 = vmatmul.mubr.f32.vlgmr.msra.gmra.mrb[0].mxu1 %v357_v52 }
  0xc5   :  { %885 = vpow2.f32 %v184_v50  ;;  %v339_v11 = vmul.f32 1.442695, %v333_v2  ;;  %v341_v14 = vmul.f32 1.442695, %v334_v3  ;;  %268 = vmatprep.mubr.f32.mxu0 %v201_v6  ;;  %833 = vmatpush3.bf16.msra.mxu1 %v1053_v13  ;;  %v455_v15 = vpop.permute.xlu1 %454 }
  0xc6   :  { %887 = vpow2.f32 %v313_v7  ;;  %269 = vmatmul.mubr.f32.vlgmr.msra.gmra.mrb[0].mxu0 %v200_v61  ;;  %v463_v16 = vmul.f32 %v455_v15, %v1175_v56  ;;  %v460_v5 = vpop.permute.xlu0 %459  ;;  %826 = vmatprep.subr.bf16.mxu1 %v1061_v19  ;;  %v462_v4 = vmul.f32 %v455_v15, %v1173_v55 }
  0xc7   :  { %889 = vpow2.f32 %v315_v10  ;;  %796 = vmatpush3.bf16.msra.mxu0 %v1053_v13  ;;  %v465_v21 = vmul.f32 %v460_v5, %v1175_v56  ;;  %v464_v33 = vmul.f32 %v460_v5, %v1173_v55 }
  0xc8   :  { %891 = vpow2.f32 %v339_v11  ;;  %798 = vmatprep.subr.bf16.mxu0 %v1061_v19  ;;  %v468_v24 = vmul.f32 1.442695, %v463_v16  ;;  %v466_v49 = vmul.f32 1.442695, %v462_v4 }
  0xc9   :  { %893 = vpow2.f32 %v341_v14  ;;  %834 = vmatpush3.bf16.msra.mxu1 %v1070_v23  ;;  %v481_v25 = vpop.permute.xlu1 %480  ;;  %v472_v26 = vmul.f32 1.442695, %v465_v21  ;;  %v470_v45 = vmul.f32 1.442695, %v464_v33 }
  0xca   :  { %v489_v27 = vmul.f32 %v481_v25, %v1175_v56  ;;  %v486_v28 = vpop.permute.xlu0 %485  ;;  %827 = vmatprep.subr.bf16.mxu1 %v1081_v31  ;;  %v488_v13 = vmul.f32 %v481_v25, %v1173_v55  ;;  %895 = vpow2.f32 %v468_v24 }
  0xcb   :  { %800 = vmatpush3.bf16.msra.mxu0 %v1070_v23  ;;  %v490_v29 = vmul.f32 %v486_v28, %v1173_v55  ;;  %v491_v32 = vmul.f32 %v486_v28, %v1175_v56  ;;  %897 = vpow2.f32 %v472_v26 }
  0xcc   :  { %v880_v19 = vpop.eup %879  ;;  %v494_v17 = vmul.f32 1.442695, %v489_v27  ;;  %802 = vmatprep.subr.bf16.mxu0 %v1081_v31  ;;  %v492_v44 = vmul.f32 1.442695, %v488_v13 }
  0xcd   :  { %v882_v35 = vpop.eup %881  ;;  %v498_v36 = vmul.f32 1.442695, %v491_v32  ;;  %835 = vmatpush3.bf16.msra.mxu1 %v1095_v40  ;;  %v1216_v23 = vpop.permute.xlu1 %157  ;;  %v496_v38 = vmul.f32 1.442695, %v490_v29 }
  0xce   :  { %v884_v37 = vpop.eup %883  ;;  %v162_v56 = vmul.f32 %v880_v19, %v1216_v23  ;;  %v163_v39 = vmul.f32 %v882_v35, %v1216_v23  ;;  %v194_v42 = vpop.permute.xlu0 %193  ;;  %828 = vmatprep.subr.bf16.mxu1 %v1097_v41  ;;  %899 = vpow2.f32 %v494_v17 }
  0xcf   :  { %v886_v31 = vpop.eup %885  ;;  %804 = vmatpush3.bf16.msra.mxu0 %v1095_v40  ;;  %v198_v55 = vmul.f32 %v884_v37, %v194_v42  ;;  %901 = vpow2.f32 %v498_v36 }
  0xd0   :  { %v888_v12 = vpop.eup %887  ;;  %v199_v46 = vmul.f32 %v886_v31, %v194_v42  ;;  %806 = vmatprep.subr.bf16.mxu0 %v1097_v41  ;;  %903 = vpow2.f32 %v496_v38 }
  0xd1   :  { %v890_v48 = vpop.eup %889  ;;  %v202_v51 = vadd.f32 %v198_v55, %v162_v56  ;;  %836 = vmatpush3.bf16.msra.mxu1 %v1101_v43  ;;  %v319_v52 = vmul.f32 %v888_v12, %v1216_v23  ;;  %v351_v53 = vpop.permute.xlu1 %350  ;;  %905 = vpow2.f32 %v492_v44 }
  0xd2   :  { %v892_v8 = vpop.eup %891  ;;  %v203_v57 = vadd.f32 %v199_v46, %v163_v39  ;;  %v320_v40 = vmul.f32 %v890_v48, %v1216_v23  ;;  %829 = vmatprep.subr.bf16.mxu1 %v1107_v47  ;;  %907 = vpow2.f32 %v470_v45  ;;  %v503_v63 = vpop.permute.xlu0 %502 }
  0xd3   :  { %v894_v58 = vpop.eup %893  ;;  %808 = vmatpush3.bf16.msra.mxu0 %v1101_v43  ;;  %v355_v41 = vmul.f32 %v892_v8, %v351_v53  ;;  %909 = vpow2.f32 %v466_v49 }
  0xd4   :  { %v356_v50 = vmul.f32 %v894_v58, %v351_v53  ;;  %273 = vmatprep.mubr.f32.mxu0 %v203_v57  ;;  %810 = vmatprep.subr.bf16.mxu0 %v1107_v47  ;;  %v896_v61 = vpop.eup %895 }
  0xd5   :  { %v359_v59 = vadd.f32 %v355_v41, %v319_v52  ;;  %274 = vmatmul.mubr.f32.gmra.mrb[2].mxu0 %v202_v51  ;;  %837 = vmatpush3.bf16.msra.mxu1 %v1118_v54  ;;  %v898_v62 = vpop.eup %897  ;;  %v475_v47 = vmul.f32 %v896_v61, %v1185_v22  ;;  %v508_v3 = vpop.permute.xlu1 %507 }
  0xd6   :  { %v360_v60 = vadd.f32 %v356_v50, %v320_v40  ;;  %830 = vmatprep.subr.bf16.mxu1 %v1126_v0  ;;  %v477_v7 = vmul.f32 %v898_v62, %v1216_v23 }
  0xd7   :  { %812 = vmatpush3.bf16.msra.mxu0 %v1118_v54 }
  0xd8   :  { %430 = vmatprep.mubr.f32.mxu1 %v360_v60  ;;  %814 = vmatprep.subr.bf16.mxu0 %v1126_v0  ;;  %v900_v43 = vpop.eup %899 }
  0xd9   :  { %431 = vmatmul.mubr.f32.gmra.mrb[2].mxu1 %v359_v59  ;;  %v511_v1 = vmul.f32 %v900_v43, %v503_v63  ;;  %v902_v2 = vpop.eup %901 }
  0xda   :  { %838 = vmatpush3.bf16.msra.mxu1 %v1133_v9  ;;  %v904_v6 = vpop.eup %903  ;;  %v513_v10 = vmul.f32 %v902_v2, %v508_v3 }
  0xdb   :  { %816 = vmatpush3.bf16.msra.mxu0 %v1133_v9  ;;  %831 = vmatprep.subr.bf16.mxu1 %v1140_v20  ;;  %v515_v54 = vadd.f32 %v511_v1, %v475_v47  ;;  %v906_v0 = vpop.eup %905  ;;  %v512_v16 = vmul.f32 %v904_v6, %v508_v3 }
  0xdc   :  { %818 = vmatprep.subr.bf16.mxu0 %v1140_v20  ;;  %v908_v11 = vpop.eup %907  ;;  %v517_v14 = vadd.f32 %v513_v10, %v477_v7  ;;  %v510_v9 = vmul.f32 %v906_v0, %v503_v63 }
  0xdd   :  { %582 = vmatprep.mubr.f32.mxu0 %v515_v54  ;;  %v910_v15 = vpop.eup %909  ;;  %v476_v5 = vmul.f32 %v908_v11, %v1216_v23 }
  0xde   :  { %839 = vmatpush3.bf16.msra.mxu1 %v1144_v18  ;;  %587 = vmatprep.mubr.f32.mxu1 %v517_v14  ;;  %v474_v20 = vmul.f32 %v910_v15, %v1185_v22 }
  0xdf   :  { %820 = vmatpush3.bf16.msra.mxu0 %v1144_v18  ;;  %832 = vmatprep.subr.bf16.mxu1 %v1151_v30  ;;  %v516_v21 = vadd.f32 %v512_v16, %v476_v5 }
  0xe0   :  { %822 = vmatprep.subr.bf16.mxu0 %v1151_v30  ;;  %v514_v24 = vadd.f32 %v510_v9, %v474_v20 }
  0xe2   :  { %840 = vmatpush3.bf16.msra.mxu1 %v1155_v34 }
  0xe3   :  { %824 = vmatpush3.bf16.msra.mxu0 %v1155_v34 }
  0xe5   :  { %588 = vmatmul.mubr.f32.vlgmr.msra.gmra.mrb[4].mxu1 %v516_v21 }
  0xe6   :  { %583 = vmatmul.mubr.f32.vlgmr.msra.gmra.mrb[4].mxu0 %v514_v24 }
 0x197   :  { %v685_v25 = vpop.f32.mrb[0].mxu1 }
 0x198   :  { %v686_v18 = vpop.f32.mrb[1].mxu1 }
 0x199   :  { %v647_v26 = vpop.f32.mrb[0].mxu0  ;;  %v687_v27 = vadd.f32 %v686_v18, %v685_v25 }
 0x19a   :  { %v648_v28 = vpop.f32.mrb[1].mxu0 }
 0x19b   :  { %v649_v13 = vadd.f32 %v648_v28, %v647_v26  ;;  %436 = vst [vmem:[#allocation7 + $0x8] sm:$0xff] %v687_v27 }
 0x19d   :  { %279 = vst [vmem:[#allocation7] sm:$0xff] %v649_v13 }
 0x1a8   :  { %v650_v30 = vpop.f32.mrb[2].mxu0 }
 0x1a9   :  { %v651_v29 = vpop.f32.mrb[3].mxu0 }
 0x1aa   :  { %v652_v32 = vadd.f32 %v651_v29, %v650_v30 }
 0x1ac   :  { %280 = vst [vmem:[#allocation7 + $0x18] sm:$0xff] %v652_v32  ;;  %v688_v22 = vpop.f32.mrb[2].mxu1 }
 0x1ad   :  { %v689_v19 = vpop.f32.mrb[3].mxu1 }
 0x1ae   :  { %v690_v33 = vadd.f32 %v689_v19, %v688_v22 }
 0x1b0   :  { %437 = vst [vmem:[#allocation7 + $0x20] sm:$0xff] %v690_v33 }
 0x1b8   :  { %v726_v34 = vpop.f32.mrb[4].mxu1 }
 0x1b9   :  { %v723_v17 = vpop.f32.mrb[4].mxu0  ;;  %v727_v35 = vpop.f32.mrb[5].mxu1 }
 0x1ba   :  { %v724_v4 = vpop.f32.mrb[5].mxu0  ;;  %v728_v36 = vadd.f32 %v727_v35, %v726_v34 }
 0x1bb   :  { %v725_v23 = vadd.f32 %v724_v4, %v723_v17 }
 0x1bc   :  { %594 = vst [vmem:[#allocation7 + $0x28] sm:$0xff] %v728_v36 }
 0x1bd   :  { %593 = vst [vmem:[#allocation7 + $0x10] sm:$0xff] %v725_v23 }
 0x1be   :  { %956 = shalt.err (!%p953_p3)
}
 0x1bf   :  { %s957_s15 = scalar_lea.hbm %s1266_s7, 768 }
 0x1c0   :  { %p958_p4 = scmp.ne.s32.totalorder %s1266_s7, %s957_s15  ;;  %p961_p5 = scmp.lt.u32.totalorder %s957_s15, %s1266_s7 }
 0x1c2   :  { %p963_p6 = pnand %p961_p5, %p958_p4 }
 0x1c4   :  { %966 = shalt.err (!%p963_p6)
}
 0x1c5   :  { %s979_s20 = smov 384   ;;  %s980_s21 = smov 24  }
 0x1c6   :  { %606 = dma.vmem_to_hbm [thread:$0]  %s601_s12, 768, %s1266_s7, [#allocation4], %s979_s20, %s979_s20, %s980_s21  }
 0x1c7   :  { %971 = dma.done.wait [#allocation4], 768  }
 0x1c8   :  { %972 = vsyncadd [#allocation4], 4294966528 }
 0x1c9   :  { %610 = vsyncpa [#allocation3], 1 }
 0x1ca   :  { %611 = vsyncpa [#allocation4], 1 }
 0x1cb   :  { %612 = vsyncpa [#allocation5], 1 }

</bundles_post_ra>
